<compile_context>
chip_gen: v7x
topology: tpu7x:2x2x1
jax: 0.10.0
libtpu: 0.0.40
codegen_flags: <defaults>
</compile_context>

<pallas_src>
import jax
import jax.numpy as jnp
from jax.experimental import pallas as pl
from jax.experimental.pallas import tpu as pltpu

# TODO(synk): `ABS()` is referenced but not defined in the source module; it is
# assumed to be an elementwise absolute-value layer (|x|).

_LANE = 128
_SUBLANE = 8


def _round_up(x, m):
    return (x + m - 1) // m * m


def _model_kernel(x_ref, wT_ref, b_ref, cw_ref, cb_ref, o_ref):
    # x_ref : (TILE_B, Dp)  input tile (zero-padded beyond real D cols / B rows)
    # wT_ref: (Dp, Dp)      pre-transposed Linear weight (W^T), zero-padded
    # b_ref : (1, Dp)       Linear bias (zero-padded)
    # cw_ref: (1, Dp)       Conv2d(1x1) weight as a lane-dense row (zero-padded)
    # cb_ref: (1,)          Conv2d bias, SMEM scalar
    # o_ref : (TILE_B, 1)
    x = x_ref[...]

    # layers[0]: ABS ; layers[1]: Sigmoid  (f32 on VPU/EUP)
    t = jax.nn.sigmoid(jnp.abs(x))

    # layers[2]: Linear  ->  y = t @ W^T + b   (weight already transposed on host)
    lin = jnp.dot(t, wT_ref[...], preferred_element_type=jnp.float32) + b_ref[...]

    # layers[3] + layers[4]:  s = X + X * lin
    # (padded columns stay exactly 0 because x is 0 there, and padded rows/cols
    #  of W^T / bias / conv weight are 0, so they contribute nothing)
    s = x + x * lin

    # layers[5]: Conv2d(D -> 1, kernel 1x1) == per-row dot with a (D,) weight.
    # VPU multiply + lane reduction instead of an N=1 matmul (MXU would be <1%
    # utilized); conv bias comes from SMEM as a scalar.
    o_ref[...] = jnp.sum(s * cw_ref[...], axis=-1, keepdims=True) + cb_ref[0]


def model_forward(x, lin_w, lin_b, conv_w, conv_b):
    """x: (B, D, 1) float32. Returns (B, 1, 1, 1) float32."""
    B, D, _ = x.shape

    Dp = _round_up(D, _LANE)                 # lane-dense feature dimension
    Bp8 = _round_up(B, _SUBLANE)
    TILE_B = min(512, Bp8)                   # large batch tiles amortize per-step cost
    Bp = _round_up(Bp8, TILE_B)
    grid = (Bp // TILE_B,)

    # One-time host-side layout prep: zero-pad to lane-dense shapes, pre-transpose W.
    x2d = jnp.zeros((Bp, Dp), jnp.float32).at[:B, :D].set(x.reshape(B, D))
    wT = jnp.zeros((Dp, Dp), jnp.float32).at[:D, :D].set(lin_w.T)
    b2d = jnp.zeros((1, Dp), jnp.float32).at[0, :D].set(lin_b)
    cw2d = jnp.zeros((1, Dp), jnp.float32).at[0, :D].set(conv_w.reshape(D))
    cb1 = conv_b.reshape(1).astype(jnp.float32)

    out = pl.pallas_call(
        _model_kernel,
        out_shape=jax.ShapeDtypeStruct((Bp, 1), jnp.float32),
        grid=grid,
        in_specs=[
            pl.BlockSpec((TILE_B, Dp), lambda i: (i, 0)),   # x: tiled over batch
            pl.BlockSpec((Dp, Dp), lambda i: (0, 0)),       # W^T: VMEM-resident
            pl.BlockSpec((1, Dp), lambda i: (0, 0)),        # bias: resident
            pl.BlockSpec((1, Dp), lambda i: (0, 0)),        # conv weight: resident
            pl.BlockSpec(memory_space=pltpu.SMEM),          # conv bias: SMEM scalar
        ],
        out_specs=pl.BlockSpec((TILE_B, 1), lambda i: (i, 0)),
        compiler_params=pltpu.CompilerParams(
            dimension_semantics=("parallel",),              # v7x: split batch across TCs
        ),
    )(x2d, wT, b2d, cw2d, cb1)

    return out[:B].reshape(B, 1, 1, 1)


def _reference(x, lin_w, lin_b, conv_w, conv_b):
    B, D, _ = x.shape
    t = jax.nn.sigmoid(jnp.abs(x))                                   # (B, D, 1)
    lin = (t.reshape(B, 1, D) @ lin_w.T + lin_b).reshape(B, D, 1)
    s = x + x * lin
    cw = conv_w.reshape(D)
    out = jnp.einsum("bd,d->b", s.reshape(B, D), cw) + conv_b[0]
    return out.reshape(B, 1, 1, 1)


if __name__ == "__main__":
    B, D = 8, 32  # batch, input_size
    key = jax.random.PRNGKey(0)
    kx, kw, kb, kcw, kcb = jax.random.split(key, 5)

    x = jax.random.normal(kx, (B, D, 1), dtype=jnp.float32)
    # Synthetic parameters for nn.Linear(D, D) and nn.Conv2d(D, 1, kernel_size=1)
    lin_w = jax.random.normal(kw, (D, D), dtype=jnp.float32) * 0.1
    lin_b = jax.random.normal(kb, (D,), dtype=jnp.float32) * 0.1
    conv_w = jax.random.normal(kcw, (1, D, 1, 1), dtype=jnp.float32) * 0.1
    conv_b = jax.random.normal(kcb, (1,), dtype=jnp.float32) * 0.1

    out = model_forward(x, lin_w, lin_b, conv_w, conv_b)
    out = jax.block_until_ready(out)

    ref = _reference(x, lin_w, lin_b, conv_w, conv_b)
    assert out.shape == (B, 1, 1, 1)
    assert jnp.allclose(out, ref, atol=1e-5, rtol=1e-5), (out, ref)
    print("KERNEL_OK")
</pallas_src>

<mosaic_0001>
module attributes {stable_mosaic.version = 11 : i64} {
  func.func @_model_kernel(%arg0: i32, %arg1: memref<8x128xf32, #tpu.memory_space<vmem>>, %arg2: memref<128x128xf32, #tpu.memory_space<vmem>>, %arg3: memref<1x128xf32, #tpu.memory_space<vmem>>, %arg4: memref<1x128xf32, #tpu.memory_space<vmem>>, %arg5: memref<1xf32, #tpu.memory_space<smem>>, %arg6: memref<8x1xf32, #tpu.memory_space<vmem>>) attributes {dimension_semantics = [#tpu.dimension_semantics<parallel>], iteration_bounds = array<i64: 1>, scalar_prefetch = 0 : i64, scratch_operands = 0 : i64, tpu.core_type = #tpu.core_type<tc>, window_params = [{transform_indices = @transform_0, window_bounds = array<i64: 8, 128>}, {pipeline_mode = #tpu.pipeline_mode<synchronous>, transform_indices = @transform_1, window_bounds = array<i64: 128, 128>}, {pipeline_mode = #tpu.pipeline_mode<synchronous>, transform_indices = @transform_2, window_bounds = array<i64: 1, 128>}, {pipeline_mode = #tpu.pipeline_mode<synchronous>, transform_indices = @transform_3, window_bounds = array<i64: 1, 128>}, {transform_indices = @transform_4, window_bounds = array<i64: 1>}, {transform_indices = @transform_5, window_bounds = array<i64: 8, 1>}]} {
    %c0 = arith.constant 0 : index
    %c0_0 = arith.constant 0 : index
    %0 = vector.load %arg1[%c0, %c0_0] : memref<8x128xf32, #tpu.memory_space<vmem>>, vector<8x128xf32>
    %1 = math.absf %0 : vector<8x128xf32>
    %2 = arith.negf %1 : vector<8x128xf32>
    %3 = math.exp %2 : vector<8x128xf32>
    %cst = arith.constant 1.000000e+00 : f32
    %4 = vector.broadcast %cst : f32 to vector<8x128xf32>
    %5 = arith.addf %4, %3 : vector<8x128xf32>
    %6 = arith.divf %4, %5 : vector<8x128xf32>
    %c0_1 = arith.constant 0 : index
    %c0_2 = arith.constant 0 : index
    %7 = vector.load %arg2[%c0_1, %c0_2] : memref<128x128xf32, #tpu.memory_space<vmem>>, vector<128x128xf32>
    %cst_3 = arith.constant dense<0.000000e+00> : vector<8x128xf32>
    %8 = tpu.matmul %6, %7, %cst_3 {dimension_numbers = #tpu.dot_dimension_numbers<[1], [0], [0], [1], [0, 0, 1, 1], [], []>} : vector<8x128xf32>, vector<128x128xf32>, vector<8x128xf32> -> vector<8x128xf32>
    %c0_4 = arith.constant 0 : index
    %c0_5 = arith.constant 0 : index
    %9 = vector.load %arg3[%c0_4, %c0_5] : memref<1x128xf32, #tpu.memory_space<vmem>>, vector<1x128xf32>
    %10 = vector.broadcast %9 : vector<1x128xf32> to vector<8x128xf32>
    %11 = arith.addf %8, %10 : vector<8x128xf32>
    %12 = arith.mulf %0, %11 : vector<8x128xf32>
    %13 = arith.addf %0, %12 : vector<8x128xf32>
    %c0_6 = arith.constant 0 : index
    %c0_7 = arith.constant 0 : index
    %14 = vector.load %arg4[%c0_6, %c0_7] : memref<1x128xf32, #tpu.memory_space<vmem>>, vector<1x128xf32>
    %15 = vector.broadcast %14 : vector<1x128xf32> to vector<8x128xf32>
    %16 = arith.mulf %13, %15 : vector<8x128xf32>
    %cst_8 = arith.constant dense<0.000000e+00> : vector<8xf32>
    %17 = vector.multi_reduction <add>, %16, %cst_8 [1] : vector<8x128xf32> to vector<8xf32>
    %18 = vector.shape_cast %17 : vector<8xf32> to vector<8x1xf32>
    %c0_9 = arith.constant 0 : index
    %19 = memref.load %arg5[%c0_9] : memref<1xf32, #tpu.memory_space<smem>>
    %20 = vector.broadcast %19 : f32 to vector<8x1xf32>
    %21 = arith.addf %18, %20 : vector<8x1xf32>
    %c0_10 = arith.constant 0 : index
    %c0_11 = arith.constant 0 : index
    %22 = vector.load %arg6[%c0_10, %c0_11] : memref<8x1xf32, #tpu.memory_space<vmem>>, vector<8x1xf32>
    tpu.vector_store %arg6[%c0_10, %c0_11], %21 {strides = array<i32>} : memref<8x1xf32, #tpu.memory_space<vmem>>, vector<8x1xf32>,
    return
  }
  func.func @transform_0(%arg0: i32) -> (i32, i32) {
    %c0_i32 = arith.constant 0 : i32
    %c0_i32_0 = arith.constant 0 : i32
    return %arg0, %c0_i32 : i32, i32
  }
  func.func @transform_1(%arg0: i32) -> (i32, i32) {
    %c0_i32 = arith.constant 0 : i32
    %c0_i32_0 = arith.constant 0 : i32
    %c0_i32_1 = arith.constant 0 : i32
    return %c0_i32, %c0_i32_0 : i32, i32
  }
  func.func @transform_2(%arg0: i32) -> (i32, i32) {
    %c0_i32 = arith.constant 0 : i32
    %c0_i32_0 = arith.constant 0 : i32
    %c0_i32_1 = arith.constant 0 : i32
    return %c0_i32, %c0_i32_0 : i32, i32
  }
  func.func @transform_3(%arg0: i32) -> (i32, i32) {
    %c0_i32 = arith.constant 0 : i32
    %c0_i32_0 = arith.constant 0 : i32
    %c0_i32_1 = arith.constant 0 : i32
    return %c0_i32, %c0_i32_0 : i32, i32
  }
  func.func @transform_4(%arg0: i32) -> i32 {
    %c0_i32 = arith.constant 0 : i32
    %c0_i32_0 = arith.constant 0 : i32
    return %c0_i32 : i32
  }
  func.func @transform_5(%arg0: i32) -> (i32, i32) {
    %c0_i32 = arith.constant 0 : i32
    %c0_i32_0 = arith.constant 0 : i32
    return %arg0, %c0_i32 : i32, i32
  }
}

</mosaic_0001>

<bundles_post_ra>
// kernel: tpu_custom_call.1
= control target key start
LH: loop header
LB: loop body
LE: loop exit
PB: predicated region body
PF: predicated region fallthrough
CT: control target
= control target key end

     0   :  { %11 = vsyncpa [#allocation4], 0  ;;  %s389_s0 = inlined_call_operand.hbm [shape: f32[8,128], index: 0, kind: input, shape index: {}]   ;;  %s390_s1 = inlined_call_operand.hbm [shape: f32[128,128], index: 1, kind: input, shape index: {}]   ;;  %s391_s2 = inlined_call_operand.vmem [shape: f32[1,128], index: 2, kind: input, shape index: {}]   ;;  %s392_s3 = inlined_call_operand.vmem [shape: f32[1,128], index: 3, kind: input, shape index: {}]   ;;  %s393_s4 = inlined_call_operand.<no memory space> [shape: f32[1], index: 4, kind: input, shape index: {}]   ;;  %s394_s5 = inlined_call_operand.vmem [shape: f32[8,1], index: 5, kind: output, shape index: {}]  }
   0x1   :  { %12 = vsyncpa [#allocation6], 0  ;;  %s309_s18 = smov [#allocation3]   ;;  %s310_s20 = smov [#allocation5]  }
   0x2   :  { %s19_s19 = sshll.u32 %s309_s18, 4  ;;  %s28_s21 = sshll.u32 %s310_s20, 4  ;;  %s20_s19 = int_to_ptr.vmem [resolvable:$true] %s19_s19  ;;  %s346_s21 = int_to_ptr.vmem [resolvable:$true] %s28_s21 }
   0x3   :  { %s261_s24 = scalar_lea.hbm %s389_s0, 128 }
   0x4   :  { %p262_p0 = scmp.ne.s32.totalorder %s389_s0, %s261_s24  ;;  %p265_p1 = scmp.lt.u32.totalorder %s261_s24, %s389_s0 }
   0x6   :  { %p267_p2 = pnand %p265_p1, %p262_p0 }
   0x8   :  { %270 = shalt.err (!%p267_p2)
}
   0x9   :  { %s271_s29 = scalar_lea.vmem %s20_s19, 128  ;;  %p276_p4 = scmp.lt.s32.totalorder %s20_s19, %s20_s19 }
   0xa   :  { %p272_p3 = scmp.ne.s32.totalorder %s20_s19, %s271_s29  ;;  %p277_p5 = scmp.lt.s32.totalorder %s271_s29, %s271_s29 }
   0xc   :  { %p278_p6 = por %p277_p5, %p276_p4 }
   0xe   :  { %p279_p7 = pnand %p278_p6, %p272_p3 }
  0x10   :  { %282 = shalt.err (!%p279_p7)
}
  0x11   :  { %22 = dma.hbm_to_vmem [thread:$0]  %s389_s0, 128, %s20_s19, [#allocation4]  }
  0x12   :  { %s283_s9 = scalar_lea.hbm %s390_s1, 2048 }
  0x13   :  { %p284_p8 = scmp.ne.s32.totalorder %s390_s1, %s283_s9  ;;  %p287_p9 = scmp.lt.u32.totalorder %s283_s9, %s390_s1 }
  0x15   :  { %p289_p10 = pnand %p287_p9, %p284_p8 }
  0x17   :  { %292 = shalt.err (!%p289_p10)
}
  0x18   :  { %s293_s14 = scalar_lea.vmem %s346_s21, 2048  ;;  %p298_p12 = scmp.lt.s32.totalorder %s346_s21, %s346_s21 }
  0x19   :  { %p294_p11 = scmp.ne.s32.totalorder %s346_s21, %s293_s14  ;;  %p299_p13 = scmp.lt.s32.totalorder %s293_s14, %s293_s14 }
  0x1b   :  { %p300_p0 = por %p299_p13, %p298_p12 }
  0x1d   :  { %p301_p1 = pnand %p300_p0, %p294_p11 }
  0x1f   :  { %304 = shalt.err (!%p301_p1)
}
  0x20   :  { %s311_s0 = smov 128   ;;  %s312_s15 = smov 8  }
  0x21   :  { %34 = dma.hbm_to_vmem [thread:$0]  %s390_s1, 2048, %s346_s21, [#allocation6], %s311_s0, %s311_s0, %s312_s15  }
  0x22   :  { %305 = dma.done.wait [#allocation4], 128  }
  0x23   :  { %306 = vsyncadd [#allocation4], 4294967168 }
  0x24   :  { %307 = dma.done.wait [#allocation6], 2048  }
  0x25   :  { %308 = vsyncadd [#allocation6], 4294965248  ;;  %v313_v0 = vmov 0.0|0.0   ;;  %vm314_vm0 = vmmov 0   ;;  %v315_v1 = vmov 0.0   ;;  %v55_v2 = vld [vmem:[#allocation5] sm:$0xff]  ;;  %v161_v40 = vstv %s393_s4 }
  0x26   :  { %226 = vmatprep.subr.bf16.mxu0 %v313_v0  ;;  %223 = vmatprep.mubr.msk.f32.mxu0 %vm314_vm0, %v315_v1  ;;  %v56_v3 = vld [vmem:[#allocation5 + $0x8] sm:$0xff]  ;;  %v57_v4 = vld [vmem:[#allocation5 + $0x10] sm:$0xff]  ;;  %v58_v6 = vld [vmem:[#allocation5 + $0x18] sm:$0xff]  ;;  %vm163_vm1 = vcmask 7168  }
  0x27   :  { %v227_v5 = vpack.c.bf16 %v56_v3, %v55_v2  ;;  %v230_v7 = vpack.c.bf16 %v58_v6, %v57_v4  ;;  %v59_v8 = vld [vmem:[#allocation5 + $0x20] sm:$0xff]  ;;  %v60_v9 = vld [vmem:[#allocation5 + $0x28] sm:$0xff]  ;;  %v47_v10 = vld [vmem:[#allocation3] sm:$0xff] }
  0x28   :  { %v48_v11 = vand.u32 2147483647, %v47_v10  ;;  %v233_v12 = vpack.c.bf16 %v60_v9, %v59_v8  ;;  %v61_v13 = vld [vmem:[#allocation5 + $0x30] sm:$0xff]  ;;  %v62_v14 = vld [vmem:[#allocation5 + $0x38] sm:$0xff]  ;;  %v63_v17 = vld [vmem:[#allocation5 + $0x40] sm:$0xff] }
  0x29   :  { %228 = vmatpush3.bf16.msra.mxu0 %v227_v5  ;;  %v236_v16 = vpack.c.bf16 %v62_v14, %v61_v13  ;;  %v64_v18 = vld [vmem:[#allocation5 + $0x48] sm:$0xff]  ;;  %v65_v20 = vld [vmem:[#allocation5 + $0x50] sm:$0xff]  ;;  %v66_v21 = vld [vmem:[#allocation5 + $0x58] sm:$0xff] }
  0x2a   :  { %229 = vmatprep.subr.bf16.mxu0 %v313_v0  ;;  %v171_v15 = vmul.f32 -1.442695, %v48_v11  ;;  %v239_v19 = vpack.c.bf16 %v64_v18, %v63_v17  ;;  %v242_v22 = vpack.c.bf16 %v66_v21, %v65_v20  ;;  %v67_v24 = vld [vmem:[#allocation5 + $0x60] sm:$0xff]  ;;  %v68_v25 = vld [vmem:[#allocation5 + $0x68] sm:$0xff]  ;;  %v69_v28 = vld [vmem:[#allocation5 + $0x70] sm:$0xff] }
  0x2b   :  { %v245_v27 = vpack.c.bf16 %v68_v25, %v67_v24  ;;  %v70_v29 = vld [vmem:[#allocation5 + $0x78] sm:$0xff] }
  0x2c   :  { %257 = vpow2.f32 %v171_v15  ;;  %v248_v30 = vpack.c.bf16 %v70_v29, %v69_v28  ;;  %v172_v32 = vld [vmem:[%s391_s2] ss:$0 sm:$0xff] }
  0x2d   :  { %231 = vmatpush3.bf16.msra.mxu0 %v230_v7  ;;  %v173_v37 = vld [vmem:[%s392_s3] ss:$0 sm:$0xff] }
  0x2e   :  { %232 = vmatprep.subr.bf16.mxu0 %v313_v0 }
  0x31   :  { %234 = vmatpush3.bf16.msra.mxu0 %v233_v12 }
  0x32   :  { %235 = vmatprep.subr.bf16.mxu0 %v313_v0 }
  0x35   :  { %237 = vmatpush3.bf16.msra.mxu0 %v236_v16 }
  0x36   :  { %238 = vmatprep.subr.bf16.mxu0 %v313_v0  ;;  %v258_v23 = vpop.eup %257 }
  0x37   :  { %v52_v26 = vadd.f32 1.0, %v258_v23 }
  0x39   :  { %240 = vmatpush3.bf16.msra.mxu0 %v239_v19  ;;  %259 = vrcp.f32 %v52_v26 }
  0x3a   :  { %241 = vmatprep.subr.bf16.mxu0 %v313_v0 }
  0x3d   :  { %243 = vmatpush3.bf16.msra.mxu0 %v242_v22 }
  0x3e   :  { %244 = vmatprep.subr.bf16.mxu0 %v313_v0 }
  0x41   :  { %246 = vmatpush3.bf16.msra.mxu0 %v245_v27 }
  0x42   :  { %247 = vmatprep.subr.bf16.mxu0 %v313_v0 }
  0x43   :  { %v260_v31 = vpop.eup %259 }
  0x45   :  { %249 = vmatpush3.bf16.msra.mxu0 %v248_v30 }
  0x48   :  { %224 = vmatmul.mubr.f32.vlgmr.msra.gmra.mrb[0].mxu0 %v260_v31 }
 0x11b   :  { %v144_v33 = vpop.f32.mrb[0].mxu0 }
 0x11c   :  { %v145_v34 = vadd.f32 %v172_v32, %v144_v33  ;;  %v225_v35 = vpop.f32.mrb[1].mxu0 }
 0x11e   :  { %v148_v36 = vmul.f32 %v145_v34, %v47_v10 }
 0x120   :  { %v149_v38 = vadd.f32 %v148_v36, %v47_v10 }
 0x122   :  { %v157_v39 = vmul.f32 %v173_v37, %v149_v38 }
 0x124   :  { %158 = vadd.xlane.f32.xlu0 %v157_v39 }
 0x1b1   :  { %v159_v41 = vpop.xlane.xlu0 %158 }
 0x1b2   :  { %v162_v42 = vadd.f32 %v161_v40, %v159_v41 }
 0x1b4   :  { %164 = vst.msk [vmem:[%s394_s5] sm:$0xff] %vm163_vm1, %v162_v42 }
 0x1b5   :  { %169 = vsyncpa [#allocation4], 1 }
 0x1b6   :  { %170 = vsyncpa [#allocation6], 1 }

</bundles_post_ra>
